<compile_context>
chip_gen: v5e
topology: v5e:2x2
jax: 0.10.0
libtpu: 0.0.40
codegen_flags: <defaults>
</compile_context>

<pallas_src>
from functools import partial

import jax
import jax.numpy as jnp
from jax.experimental import pallas as pl
from jax.experimental.pallas import tpu as pltpu


def _round_up(x, m):
    return ((x + m - 1) // m) * m


def _mlp_kernel(x_ref, w1_ref, b1_ref, w2_ref, b2_ref, o_ref):
    # Fused matmul + relu + matmul + sigmoid, all resident in VMEM.
    x = x_ref[...].astype(w1_ref.dtype)                   # free in-VMEM cast
    h = jnp.dot(x, w1_ref[...], preferred_element_type=jnp.float32) + b1_ref[...]
    h = jnp.maximum(h, 0.0)                                # relu   (VPU, f32)
    y = jnp.dot(h.astype(w2_ref.dtype), w2_ref[...],
                preferred_element_type=jnp.float32) + b2_ref[...]
    o_ref[...] = jax.nn.sigmoid(y).astype(o_ref.dtype)     # sigmoid (EUP, f32)


def prepare_params(w1, b1, w2, b2, *, matmul_dtype=jnp.float32):
    """One-time parameter prep (NOT in the hot path).

    torch.nn.Linear layout  W1:(hidden,in) b1:(hidden,)  W2:(out,hidden)
    b2:(out,)  ->  W1t:(in,Hp)  b1:(1,Hp)  W2t:(Hp,out)  b2:(1,out)
    with the hidden dim zero-padded to a multiple of 128 (lane-dense
    intermediate; padded columns/rows are zero so the math is unchanged).
    Weights may be stored in bf16 for the MXU; biases stay f32."""
    w1 = jnp.asarray(w1, jnp.float32)
    b1 = jnp.asarray(b1, jnp.float32)
    w2 = jnp.asarray(w2, jnp.float32)
    b2 = jnp.asarray(b2, jnp.float32)

    hidden, in_sz = w1.shape
    out_sz = w2.shape[0]
    Hp = _round_up(hidden, 128)

    w1_t = (jnp.zeros((in_sz, Hp), jnp.float32)
            .at[:, :hidden].set(w1.T).astype(matmul_dtype))
    b1_r = jnp.zeros((1, Hp), jnp.float32).at[:, :hidden].set(b1)
    w2_t = (jnp.zeros((Hp, out_sz), jnp.float32)
            .at[:hidden, :].set(w2.T).astype(matmul_dtype))
    b2_r = b2.reshape(1, out_sz)
    return w1_t, b1_r, w2_t, b2_r


def _choose_tile_b(batch):
    """Large tiles to amortize per-step overhead, but keep >=2 grid steps so
    v7x's two TensorCores both get work; cap at 2048, sublane-aligned."""
    if batch <= 256:
        return _round_up(max(batch, 1), 8)
    half = _round_up(pl.cdiv(batch, 2), 8)
    return max(256, min(2048, half))


@partial(jax.jit, static_argnames=("min_pallas_batch",))
def firewall_mlp(x, w1_t, b1_r, w2_t, b2_r, *, min_pallas_batch=1024):
    """x: (B, in).  Params must come from prepare_params().  Output: (B, out) f32."""
    B, in_sz = x.shape
    assert in_sz == w1_t.shape[0]
    Hp = w1_t.shape[1]
    out_sz = w2_t.shape[1]

    if B < min_pallas_batch:
        # Tiny batch: XLA fuses the whole MLP; Pallas fixed cost would dominate.
        xf = x.astype(w1_t.dtype)
        h = jnp.maximum(
            jnp.dot(xf, w1_t, preferred_element_type=jnp.float32) + b1_r, 0.0)
        y = jnp.dot(h.astype(w2_t.dtype), w2_t,
                    preferred_element_type=jnp.float32) + b2_r
        return jax.nn.sigmoid(y)

    tile_b = _choose_tile_b(B)
    grid = (pl.cdiv(B, tile_b),)   # partial last block is masked by Pallas

    return pl.pallas_call(
        _mlp_kernel,
        out_shape=jax.ShapeDtypeStruct((B, out_sz), jnp.float32),
        grid=grid,
        in_specs=[
            pl.BlockSpec((tile_b, in_sz), lambda i: (i, 0)),   # x:  streamed
            pl.BlockSpec((in_sz, Hp), lambda i: (0, 0)),        # W1: resident
            pl.BlockSpec((1, Hp), lambda i: (0, 0)),            # b1: resident
            pl.BlockSpec((Hp, out_sz), lambda i: (0, 0)),       # W2: resident
            pl.BlockSpec((1, out_sz), lambda i: (0, 0)),        # b2: resident
        ],
        out_specs=pl.BlockSpec((tile_b, out_sz), lambda i: (i, 0)),  # narrow y
        compiler_params=pltpu.CompilerParams(
            dimension_semantics=("parallel",)),  # v7x: batch over 2 TCs
    )(x, w1_t, b1_r, w2_t, b2_r)


def _reference(x, w1, b1, w2, b2):
    h = jnp.maximum(x @ w1.T + b1, 0.0)
    return jax.nn.sigmoid(h @ w2.T + b2)


if __name__ == "__main__":
    input_size, hidden_size, output_size = 16, 32, 8

    key = jax.random.PRNGKey(0)
    kx, kw1, kb1, kw2, kb2, kx2 = jax.random.split(key, 6)

    # torch.nn.Linear shapes: W (out, in), b (out,)
    w1 = jax.random.normal(kw1, (hidden_size, input_size), jnp.float32) * 0.1
    b1 = jax.random.normal(kb1, (hidden_size,), jnp.float32) * 0.1
    w2 = jax.random.normal(kw2, (output_size, hidden_size), jnp.float32) * 0.1
    b2 = jax.random.normal(kb2, (output_size,), jnp.float32) * 0.1

    # ---- exact-parity f32 params ----
    params_f32 = prepare_params(w1, b1, w2, b2, matmul_dtype=jnp.float32)

    # Small (spec-like) batch, Pallas path forced.
    x_small = jax.random.normal(kx, (8, input_size), jnp.float32)
    out_small = firewall_mlp(x_small, *params_f32, min_pallas_batch=1)
    jax.block_until_ready(out_small)
    ref_small = _reference(x_small, w1, b1, w2, b2)
    assert out_small.shape == (8, output_size)
    assert jnp.allclose(out_small, ref_small, atol=1e-5, rtol=1e-5)

    # Non-divisible batch: multi-step grid + masked partial last tile (no jnp.pad).
    x_big = jax.random.normal(kx2, (1000, input_size), jnp.float32)
    out_big = firewall_mlp(x_big, *params_f32, min_pallas_batch=1)
    jax.block_until_ready(out_big)
    ref_big = _reference(x_big, w1, b1, w2, b2)
    assert out_big.shape == (1000, output_size)
    assert jnp.allclose(out_big, ref_big, atol=1e-5, rtol=1e-5)

    # bf16 matmul-input variant (MXU-native on v5e/v6e/v7x), looser tolerance.
    params_bf16 = prepare_params(w1, b1, w2, b2, matmul_dtype=jnp.bfloat16)
    out_bf16 = firewall_mlp(x_big, *params_bf16, min_pallas_batch=1)
    jax.block_until_ready(out_bf16)
    assert jnp.allclose(out_bf16, ref_big, atol=2e-2, rtol=2e-2)

    # Default fast path (XLA) for tiny batches.
    out_fast = firewall_mlp(x_small, *params_f32)
    jax.block_until_ready(out_fast)
    assert jnp.allclose(out_fast, ref_small, atol=1e-5, rtol=1e-5)

    print("KERNEL_OK")
</pallas_src>

<mosaic_0001>
module attributes {stable_mosaic.version = 11 : i64} {
  func.func @_mlp_kernel(%arg0: i32, %arg1: memref<8x16xf32, #tpu.memory_space<vmem>>, %arg2: memref<16x128xf32, #tpu.memory_space<vmem>>, %arg3: memref<1x128xf32, #tpu.memory_space<vmem>>, %arg4: memref<128x8xf32, #tpu.memory_space<vmem>>, %arg5: memref<1x8xf32, #tpu.memory_space<vmem>>, %arg6: memref<8x8xf32, #tpu.memory_space<vmem>>) attributes {dimension_semantics = [#tpu.dimension_semantics<parallel>], iteration_bounds = array<i64: 1>, scalar_prefetch = 0 : i64, scratch_operands = 0 : i64, tpu.core_type = #tpu.core_type<tc>, window_params = [{transform_indices = @transform_0, window_bounds = array<i64: 8, 16>}, {pipeline_mode = #tpu.pipeline_mode<synchronous>, transform_indices = @transform_1, window_bounds = array<i64: 16, 128>}, {pipeline_mode = #tpu.pipeline_mode<synchronous>, transform_indices = @transform_2, window_bounds = array<i64: 1, 128>}, {pipeline_mode = #tpu.pipeline_mode<synchronous>, transform_indices = @transform_3, window_bounds = array<i64: 128, 8>}, {pipeline_mode = #tpu.pipeline_mode<synchronous>, transform_indices = @transform_4, window_bounds = array<i64: 1, 8>}, {transform_indices = @transform_5, window_bounds = array<i64: 8, 8>}]} {
    %c0 = arith.constant 0 : index
    %c0_0 = arith.constant 0 : index
    %0 = vector.load %arg1[%c0, %c0_0] : memref<8x16xf32, #tpu.memory_space<vmem>>, vector<8x16xf32>
    %c0_1 = arith.constant 0 : index
    %c0_2 = arith.constant 0 : index
    %1 = vector.load %arg2[%c0_1, %c0_2] : memref<16x128xf32, #tpu.memory_space<vmem>>, vector<16x128xf32>
    %cst = arith.constant dense<0.000000e+00> : vector<8x128xf32>
    %2 = tpu.matmul %0, %1, %cst {dimension_numbers = #tpu.dot_dimension_numbers<[1], [0], [0], [1], [0, 0, 1, 1], [], []>} : vector<8x16xf32>, vector<16x128xf32>, vector<8x128xf32> -> vector<8x128xf32>
    %c0_3 = arith.constant 0 : index
    %c0_4 = arith.constant 0 : index
    %3 = vector.load %arg3[%c0_3, %c0_4] : memref<1x128xf32, #tpu.memory_space<vmem>>, vector<1x128xf32>
    %4 = vector.broadcast %3 : vector<1x128xf32> to vector<8x128xf32>
    %5 = arith.addf %2, %4 : vector<8x128xf32>
    %cst_5 = arith.constant 0.000000e+00 : f32
    %6 = vector.broadcast %cst_5 : f32 to vector<8x128xf32>
    %7 = arith.maximumf %5, %6 : vector<8x128xf32>
    %c0_6 = arith.constant 0 : index
    %c0_7 = arith.constant 0 : index
    %8 = vector.load %arg4[%c0_6, %c0_7] : memref<128x8xf32, #tpu.memory_space<vmem>>, vector<128x8xf32>
    %cst_8 = arith.constant dense<0.000000e+00> : vector<8x8xf32>
    %9 = tpu.matmul %7, %8, %cst_8 {dimension_numbers = #tpu.dot_dimension_numbers<[1], [0], [0], [1], [0, 0, 1, 1], [], []>} : vector<8x128xf32>, vector<128x8xf32>, vector<8x8xf32> -> vector<8x8xf32>
    %c0_9 = arith.constant 0 : index
    %c0_10 = arith.constant 0 : index
    %10 = vector.load %arg5[%c0_9, %c0_10] : memref<1x8xf32, #tpu.memory_space<vmem>>, vector<1x8xf32>
    %11 = vector.broadcast %10 : vector<1x8xf32> to vector<8x8xf32>
    %12 = arith.addf %9, %11 : vector<8x8xf32>
    %13 = arith.negf %12 : vector<8x8xf32>
    %14 = math.exp %13 : vector<8x8xf32>
    %cst_11 = arith.constant 1.000000e+00 : f32
    %15 = vector.broadcast %cst_11 : f32 to vector<8x8xf32>
    %16 = arith.addf %15, %14 : vector<8x8xf32>
    %17 = arith.divf %15, %16 : vector<8x8xf32>
    %c0_12 = arith.constant 0 : index
    %c0_13 = arith.constant 0 : index
    %18 = vector.load %arg6[%c0_12, %c0_13] : memref<8x8xf32, #tpu.memory_space<vmem>>, vector<8x8xf32>
    tpu.vector_store %arg6[%c0_12, %c0_13], %17 {strides = array<i32>} : memref<8x8xf32, #tpu.memory_space<vmem>>, vector<8x8xf32>,
    return
  }
  func.func @transform_0(%arg0: i32) -> (i32, i32) {
    %c0_i32 = arith.constant 0 : i32
    %c0_i32_0 = arith.constant 0 : i32
    return %arg0, %c0_i32 : i32, i32
  }
  func.func @transform_1(%arg0: i32) -> (i32, i32) {
    %c0_i32 = arith.constant 0 : i32
    %c0_i32_0 = arith.constant 0 : i32
    %c0_i32_1 = arith.constant 0 : i32
    return %c0_i32, %c0_i32_0 : i32, i32
  }
  func.func @transform_2(%arg0: i32) -> (i32, i32) {
    %c0_i32 = arith.constant 0 : i32
    %c0_i32_0 = arith.constant 0 : i32
    %c0_i32_1 = arith.constant 0 : i32
    return %c0_i32, %c0_i32_0 : i32, i32
  }
  func.func @transform_3(%arg0: i32) -> (i32, i32) {
    %c0_i32 = arith.constant 0 : i32
    %c0_i32_0 = arith.constant 0 : i32
    %c0_i32_1 = arith.constant 0 : i32
    return %c0_i32, %c0_i32_0 : i32, i32
  }
  func.func @transform_4(%arg0: i32) -> (i32, i32) {
    %c0_i32 = arith.constant 0 : i32
    %c0_i32_0 = arith.constant 0 : i32
    %c0_i32_1 = arith.constant 0 : i32
    return %c0_i32, %c0_i32_0 : i32, i32
  }
  func.func @transform_5(%arg0: i32) -> (i32, i32) {
    %c0_i32 = arith.constant 0 : i32
    %c0_i32_0 = arith.constant 0 : i32
    return %arg0, %c0_i32 : i32, i32
  }
}

</mosaic_0001>

<bundles_post_ra>
// kernel: firewall_mlp.1
= control target key start
LH: loop header
LB: loop body
LE: loop exit
PB: predicated region body
PF: predicated region fallthrough
CT: control target
= control target key end

     0   :  { %vm28_vm0 = vcmask 130048   ;;  %s262_s0 = inlined_call_operand.vmem [shape: f32[8,16], index: 0, kind: input, shape index: {}]   ;;  %s263_s1 = inlined_call_operand.vmem [shape: f32[16,128], index: 1, kind: input, shape index: {}]   ;;  %s264_s2 = inlined_call_operand.vmem [shape: f32[1,128], index: 2, kind: input, shape index: {}]   ;;  %s265_s3 = inlined_call_operand.vmem [shape: f32[128,8], index: 3, kind: input, shape index: {}]   ;;  %s266_s4 = inlined_call_operand.vmem [shape: f32[1,8], index: 4, kind: input, shape index: {}]   ;;  %s267_s5 = inlined_call_operand.hbm [shape: f32[8,8], index: 5, kind: output, shape index: {}]  }
   0x1   :  { %v23_v0 = vld [vmem:[%s263_s1 + $0x8] sm:$0xff]  ;;  %v22_v1 = vld [vmem:[%s263_s1] sm:$0xff]  ;;  %v68_v3 = vld [vmem:[%s265_s3 + $0x78] sm:$0xff] }
   0x2   :  { %46 = vmatpush.msra.mxu0 %v23_v0  ;;  %v21_v2 = vld [vmem:[%s262_s0] sm:$0xff]  ;;  %v67_v4 = vld [vmem:[%s265_s3 + $0x70] sm:$0xff]  ;;  %73 = vmatpush.msra.mxu1 %v68_v3  ;;  %v66_v5 = vld [vmem:[%s265_s3 + $0x68] sm:$0xff] }
   0x3   :  { %v65_v6 = vld [vmem:[%s265_s3 + $0x60] sm:$0xff] }
   0x4   :  { %47 = vmatpush.msra.mxu0 %v22_v1  ;;  %74 = vmatpush.msra.mxu1 %v67_v4 }
   0x5   :  { %130 = vmatmul.msk.f32.vlgmr.msra.gmra.mxu0 %vm28_vm0, %v21_v2 }
   0x6   :  { %75 = vmatpush.msra.mxu1 %v66_v5 }
   0x7   :  { %10 = vsyncpa [#allocation3], 0  ;;  %v64_v7 = vld [vmem:[%s265_s3 + $0x58] sm:$0xff]  ;;  %v63_v8 = vld [vmem:[%s265_s3 + $0x50] sm:$0xff]  ;;  %vm112_vm4 = vcmask 64512  }
   0x8   :  { %76 = vmatpush.msra.mxu1 %v65_v6  ;;  %v62_v9 = vld [vmem:[%s265_s3 + $0x48] sm:$0xff]  ;;  %v61_v10 = vld [vmem:[%s265_s3 + $0x40] sm:$0xff]  ;;  %v60_v11 = vld [vmem:[%s265_s3 + $0x38] sm:$0xff] }
   0x9   :  { %v59_v12 = vld [vmem:[%s265_s3 + $0x30] sm:$0xff]  ;;  %v58_v13 = vld [vmem:[%s265_s3 + $0x28] sm:$0xff]  ;;  %v57_v14 = vld [vmem:[%s265_s3 + $0x20] sm:$0xff] }
   0xa   :  { %77 = vmatpush.msra.mxu1 %v64_v7  ;;  %v56_v15 = vld [vmem:[%s265_s3 + $0x18] sm:$0xff]  ;;  %v55_v16 = vld [vmem:[%s265_s3 + $0x10] sm:$0xff]  ;;  %v54_v17 = vld [vmem:[%s265_s3 + $0x8] sm:$0xff] }
   0xb   :  { %v53_v18 = vld [vmem:[%s265_s3] sm:$0xff] }
   0xc   :  { %78 = vmatpush.msra.mxu1 %v63_v8  ;;  %v133_v19 = vld [vmem:[%s264_s2] ss:$0 sm:$0xff]  ;;  %s165_s2 = smov [#allocation2]  }
   0xd   :  { %v134_v23 = vld [vmem:[%s266_s4] ss:$0 sm:$0xff]  ;;  %s119_s3 = sshll.u32 %s165_s2, 4  ;;  %s121_s4 = sshll.u32 %s267_s5, 4  ;;  %s120_s3 = int_to_ptr.vmem [resolvable:$true] %s119_s3  ;;  %s122_s4 = int_to_ptr.hbm [resolvable:$true] %s121_s4 }
   0xe   :  { %79 = vmatpush.msra.mxu1 %v62_v9 }
  0x10   :  { %80 = vmatpush.msra.mxu1 %v61_v10 }
  0x12   :  { %81 = vmatpush.msra.mxu1 %v60_v11 }
  0x14   :  { %82 = vmatpush.msra.mxu1 %v59_v12 }
  0x16   :  { %83 = vmatpush.msra.mxu1 %v58_v13 }
  0x18   :  { %84 = vmatpush.msra.mxu1 %v57_v14 }
  0x1a   :  { %85 = vmatpush.msra.mxu1 %v56_v15 }
  0x1c   :  { %86 = vmatpush.msra.mxu1 %v55_v16 }
  0x1e   :  { %87 = vmatpush.msra.mxu1 %v54_v17 }
  0x20   :  { %88 = vmatpush.msra.mxu1 %v53_v18 }
  0x82   :  { %v49_v20 = vpop.f32.mrf.mxu0 }
  0x83   :  { %v50_v21 = vadd.f32 %v133_v19, %v49_v20 }
  0x85   :  { %v52_v22 = vmax.f32 %v50_v21, 0.0 }
  0x87   :  { %89 = vmatmul.f32.vlgmr.msra.gmra.mxu1 %v52_v22 }
 0x104   :  { %v90_v24 = vpop.f32.mrf.mxu1 }
 0x105   :  { %v91_v25 = vadd.f32 %v134_v23, %v90_v24 }
 0x107   :  { %v131_v26 = vmul.f32 -1.442695, %v91_v25 }
 0x109   :  { %135 = vpow2.f32 %v131_v26 }
 0x10f   :  { %v136_v27 = vpop.eup %135 }
 0x110   :  { %v96_v28 = vadd.f32 1.0, %v136_v27 }
 0x112   :  { %137 = vrcp.f32 %v96_v28  ;;  %v108_v32 = vand.u32 2147483648, %v96_v28  ;;  %v106_v34 = vand.u32 2147483647, %v96_v28  ;;  %vm102_vm2 = vweird.f32 %v96_v28 }
 0x114   :  { %v109_v36 = vor.u32 1.1754944e-38, %v108_v32  ;;  %vm107_vm5 = vcmp.eq.f32.partialorder %v106_v34, 8.507059e+37 }
 0x118   :  { %v138_v29 = vpop.eup %137 }
 0x119   :  { %v98_v30 = vmul.f32 %v138_v29, %v96_v28  ;;  %vm103_vm1 = vweird.f32 %v138_v29 }
 0x11a   :  { %vm104_vm3 = vmor %vm102_vm2, %vm103_vm1 }
 0x11b   :  { %v99_v31 = vsub.f32 1.0, %v98_v30 }
 0x11d   :  { %v100_v33 = vmul.f32 %v138_v29, %v99_v31 }
 0x11f   :  { %v101_v35 = vadd.f32 %v138_v29, %v100_v33 }
 0x121   :  { %v105_v37 = vsel %vm104_vm3, %v138_v29, %v101_v35 }
 0x122   :  { %v110_v38 = vsel %vm107_vm5, %v109_v36, %v105_v37 }
 0x123   :  { %113 = vst.msk [vmem:[#allocation2] sm:$0xff] %vm112_vm4, %v110_v38 }
 0x124   :  { %124 = dma.vmem_to_hbm [thread:$0]  %s120_s3, 128, %s122_s4, [#allocation3]  }
 0x125   :  { %163 = dma.done.wait [#allocation3], 128  }
 0x126   :  { %164 = vsyncadd [#allocation3], 4294967168 }
 0x127   :  { %129 = vsyncpa [#allocation3], 1 }

</bundles_post_ra>
